<compile_context>
chip_gen: v7x
topology: tpu7x:2x2x1
jax: 0.10.0
libtpu: 0.0.40
codegen_flags: <defaults>
</compile_context>

<pallas_src>
import functools
import math

import jax
import jax.numpy as jnp
from jax.experimental import pallas as pl
from jax.experimental.pallas import tpu as pltpu


def _round_up(x, m):
    return ((x + m - 1) // m) * m


def _pad2(a, rows, cols):
    r, c = a.shape
    if r == rows and c == cols:
        return a
    return jnp.pad(a, ((0, rows - r), (0, cols - c)))


# --------------------------------------------------------------------------
# Kernels
# --------------------------------------------------------------------------

def _cml_kernel_single(x_ref, w_ref, b_ref, o_ref):
    """Single K block: one MXU contraction, bias add, store. No accumulator."""
    o_ref[...] = (
        jax.lax.dot_general(
            x_ref[...], w_ref[...],                 # (B, K) x (tn, K) -> (B, tn)
            dimension_numbers=(((1,), (1,)), ((), ())),
            preferred_element_type=jnp.float32)
        + b_ref[...]
    ).astype(o_ref.dtype)


def _cml_kernel_multi(x_ref, w_ref, b_ref, o_ref, acc_ref, *, tk):
    """Multiple K blocks: f32 VMEM accumulator, zeroed at k==0, bias+store at
    k==last. Activations are fully resident; slice the current K chunk."""
    k = pl.program_id(1)

    @pl.when(k == 0)
    def _init():
        acc_ref[...] = jnp.zeros_like(acc_ref)

    start = pl.multiple_of(k * tk, 128)
    acc_ref[...] += jax.lax.dot_general(
        x_ref[:, pl.ds(start, tk)], w_ref[...],     # (B, tk) x (tn, tk) -> (B, tn)
        dimension_numbers=(((1,), (1,)), ((), ())),
        preferred_element_type=jnp.float32)

    @pl.when(k == pl.num_programs(1) - 1)
    def _finalize():
        o_ref[...] = (acc_ref[...] + b_ref[...]).astype(o_ref.dtype)


# --------------------------------------------------------------------------
# One-time parameter preparation (hoisted out of the per-call forward)
# --------------------------------------------------------------------------

def prepare_conditional_masked_linear(w1, mask, w2, bias, *, tn=512, tk=4096):
    """Fold the mask into W1, fuse [mask*W1 | W2] along the K axis, pad to
    lane-dense (multiples of 128) sizes, and cast to bf16. Done once at init."""
    out_f, in_f = w1.shape
    out_f2, ctx_f = w2.shape
    assert out_f == out_f2 and mask.shape == (out_f, in_f)

    in_p = _round_up(in_f, 128)
    ctx_p = _round_up(ctx_f, 128)
    k_tot = in_p + ctx_p
    tk = min(_round_up(tk, 128), k_tot)
    k_p = _round_up(k_tot, tk)

    tn = min(_round_up(tn, 128), _round_up(out_f, 128))
    out_p = _round_up(_round_up(out_f, 128), tn)

    # Fold the binary mask into the weights (exact), fuse the two GEMMs.
    wm = mask.astype(jnp.float32) * w1.astype(jnp.float32)
    wcat = jnp.concatenate(
        [_pad2(wm, out_p, in_p), _pad2(w2.astype(jnp.float32), out_p, ctx_p)],
        axis=1)
    wcat = _pad2(wcat, out_p, k_p).astype(jnp.bfloat16)     # streamed as bf16

    bias_p = _pad2(bias.reshape(1, out_f).astype(jnp.float32), 1, out_p)

    return dict(w=wcat, b=bias_p, out_f=out_f, in_f=in_f, ctx_f=ctx_f,
                in_p=in_p, ctx_p=ctx_p, k_p=k_p, out_p=out_p, tn=tn, tk=tk)


# --------------------------------------------------------------------------
# Forward
# --------------------------------------------------------------------------

def conditional_masked_linear(params, x, context, *, core_parallel=False,
                              vmem_limit_bytes=48 * 1024 * 1024):
    """out = x @ (mask*W1).T + b + context @ W2.T, using prepared params.

    core_parallel=True: use pltpu.CORE_PARALLEL on the output-tile axis to
    shard across v7x's two TensorCores (leave False on v5e/v6e).
    vmem_limit_bytes default (48 MiB) respects v7x's 64 MiB VMEM; raise on
    v6e/v5e if using larger tiles.
    """
    B = x.shape[0]
    B_p = _round_up(B, 8)
    in_p, ctx_p, k_p = params["in_p"], params["ctx_p"], params["k_p"]
    out_p, tn, tk = params["out_p"], params["tn"], params["tk"]

    # Per-call activation fuse/pad (small: B x K) — weights were prepared once.
    xcat = jnp.concatenate(
        [_pad2(x.astype(jnp.float32), B_p, in_p),
         _pad2(context.astype(jnp.float32), B_p, ctx_p)], axis=1)
    xcat = _pad2(xcat, B_p, k_p).astype(jnp.bfloat16)

    n_tiles = out_p // tn
    k_tiles = k_p // tk
    sem_n = pltpu.CORE_PARALLEL if core_parallel else "parallel"

    cost = pl.CostEstimate(
        flops=2 * B_p * k_p * out_p,
        transcendentals=0,
        bytes_accessed=(B_p * k_p * 2          # activations (bf16, resident)
                        + out_p * k_p * 2      # weights (bf16)
                        + out_p * 4            # bias
                        + B_p * out_p * 4))    # output

    if k_tiles == 1:
        kernel = _cml_kernel_single
        grid = (n_tiles,)
        in_specs = [
            pl.BlockSpec((B_p, k_p), lambda n: (0, 0)),   # resident activations
            pl.BlockSpec((tn, k_p), lambda n: (n, 0)),    # bf16 masked weights
            pl.BlockSpec((1, tn), lambda n: (0, n)),      # bias
        ]
        out_specs = pl.BlockSpec((B_p, tn), lambda n: (0, n))
        scratch = []
        dim_sem = (sem_n,)
    else:
        kernel = functools.partial(_cml_kernel_multi, tk=tk)
        grid = (n_tiles, k_tiles)                          # reduction axis last
        in_specs = [
            pl.BlockSpec((B_p, k_p), lambda n, k: (0, 0)),  # resident activations
            pl.BlockSpec((tn, tk), lambda n, k: (n, k)),    # bf16 masked weights
            pl.BlockSpec((1, tn), lambda n, k: (0, n)),     # bias
        ]
        out_specs = pl.BlockSpec((B_p, tn), lambda n, k: (0, n))
        scratch = [pltpu.VMEM((B_p, tn), jnp.float32)]
        dim_sem = (sem_n, "arbitrary")

    out_padded = pl.pallas_call(
        kernel,
        out_shape=jax.ShapeDtypeStruct((B_p, out_p), jnp.float32),
        grid_spec=pltpu.PrefetchScalarGridSpec(
            num_scalar_prefetch=0,
            grid=grid,
            in_specs=in_specs,
            out_specs=out_specs,
            scratch_shapes=scratch),
        compiler_params=pltpu.CompilerParams(
            dimension_semantics=dim_sem,
            vmem_limit_bytes=vmem_limit_bytes),
        cost_estimate=cost,
    )(xcat, params["w"], params["b"])

    return out_padded[:B, :params["out_f"]]


# --------------------------------------------------------------------------
# Deterministic re-implementation of MaskedLinear.reset_parameters
# --------------------------------------------------------------------------

def init_masked_linear_weight(key, mask, out_features, in_features):
    gain = math.sqrt(2.0)                          # calculate_gain('relu')
    n_l = mask.sum(axis=1)                         # (out_features,)
    std = gain / jnp.sqrt(n_l)
    std = jnp.where(jnp.isinf(std), 1.0, std)      # rows with empty mask -> std 1
    w = jax.random.normal(key, (out_features, in_features), dtype=jnp.float32)
    return w * std[:, None]


if __name__ == "__main__":
    B, IN_F, CTX_F, OUT_F = 8, 96, 24, 160

    key = jax.random.PRNGKey(0)
    k_mask, k_w1, k_w2, k_x, k_ctx = jax.random.split(key, 5)

    # Binary mask buffer (as registered in the module).
    mask = (jax.random.uniform(k_mask, (OUT_F, IN_F)) > 0.5).astype(jnp.float32)

    # Parameters per MaskedLinear.reset_parameters (bias init 0);
    # cond_linear is a plain Linear(context_features, out_features, bias=False).
    w1 = init_masked_linear_weight(k_w1, mask, OUT_F, IN_F)
    w2 = jax.random.normal(k_w2, (OUT_F, CTX_F), dtype=jnp.float32) / math.sqrt(CTX_F)
    bias = jnp.zeros((OUT_F,), dtype=jnp.float32)

    x = jax.random.normal(k_x, (B, IN_F), dtype=jnp.float32)
    context = jax.random.normal(k_ctx, (B, CTX_F), dtype=jnp.float32)

    # Pure-JAX references: the module's f32 forward, and the same forward with
    # bf16-rounded inputs/weights matching the kernel's streamed precision.
    ref_f32 = x @ (mask * w1).T + bias[None, :] + context @ w2.T

    def _bf(a):
        return a.astype(jnp.bfloat16).astype(jnp.float32)

    ref_bf16 = _bf(x) @ _bf(mask * w1).T + bias[None, :] + _bf(context) @ _bf(w2).T

    # Path 1: K fits in one block -> single-shot kernel (no K axis/accumulator).
    params = prepare_conditional_masked_linear(w1, mask, w2, bias, tn=512, tk=4096)
    out1 = jax.block_until_ready(conditional_masked_linear(params, x, context))

    # Path 2: force multiple K blocks to exercise the accumulating kernel.
    params2 = prepare_conditional_masked_linear(w1, mask, w2, bias, tn=128, tk=128)
    out2 = jax.block_until_ready(conditional_masked_linear(params2, x, context))

    for out in (out1, out2):
        assert out.shape == (B, OUT_F)
        # Tight check against the bf16-quantised reference (proves kernel math).
        assert jnp.allclose(out, ref_bf16, atol=2e-3, rtol=2e-3), \
            float(jnp.max(jnp.abs(out - ref_bf16)))
        # Loose check against the exact f32 module forward (bf16 weight stream).
        assert jnp.allclose(out, ref_f32, atol=6e-2, rtol=6e-2), \
            float(jnp.max(jnp.abs(out - ref_f32)))

    print("KERNEL_OK")
</pallas_src>

<mosaic_0001>
module attributes {stable_mosaic.version = 11 : i64} {
  func.func @_cml_kernel_single(%arg0: i32, %arg1: memref<8x256xbf16, #tpu.memory_space<vmem>>, %arg2: memref<256x256xbf16, #tpu.memory_space<vmem>>, %arg3: memref<1x256xf32, #tpu.memory_space<vmem>>, %arg4: memref<8x256xf32, #tpu.memory_space<vmem>>) attributes {dimension_semantics = [#tpu.dimension_semantics<parallel>], iteration_bounds = array<i64: 1>, scalar_prefetch = 0 : i64, scratch_operands = 0 : i64, tpu.core_type = #tpu.core_type<tc>, window_params = [{pipeline_mode = #tpu.pipeline_mode<synchronous>, transform_indices = @transform_0, window_bounds = array<i64: 8, 256>}, {transform_indices = @transform_1, window_bounds = array<i64: 256, 256>}, {transform_indices = @transform_2, window_bounds = array<i64: 1, 256>}, {transform_indices = @transform_3, window_bounds = array<i64: 8, 256>}]} {
    %c0 = arith.constant 0 : index
    %c0_0 = arith.constant 0 : index
    %0 = vector.load %arg1[%c0, %c0_0] : memref<8x256xbf16, #tpu.memory_space<vmem>>, vector<8x256xbf16>
    %c0_1 = arith.constant 0 : index
    %c0_2 = arith.constant 0 : index
    %1 = vector.load %arg2[%c0_1, %c0_2] : memref<256x256xbf16, #tpu.memory_space<vmem>>, vector<256x256xbf16>
    %cst = arith.constant dense<0.000000e+00> : vector<8x256xf32>
    %2 = tpu.matmul %0, %1, %cst {dimension_numbers = #tpu.dot_dimension_numbers<[1], [1], [0], [0], [0, 0, 1, 0], [], []>} : vector<8x256xbf16>, vector<256x256xbf16>, vector<8x256xf32> -> vector<8x256xf32>
    %c0_3 = arith.constant 0 : index
    %c0_4 = arith.constant 0 : index
    %3 = vector.load %arg3[%c0_3, %c0_4] : memref<1x256xf32, #tpu.memory_space<vmem>>, vector<1x256xf32>
    %4 = vector.broadcast %3 : vector<1x256xf32> to vector<8x256xf32>
    %5 = arith.addf %2, %4 : vector<8x256xf32>
    %c0_5 = arith.constant 0 : index
    %c0_6 = arith.constant 0 : index
    %6 = vector.load %arg4[%c0_5, %c0_6] : memref<8x256xf32, #tpu.memory_space<vmem>>, vector<8x256xf32>
    tpu.vector_store %arg4[%c0_5, %c0_6], %5 {strides = array<i32>} : memref<8x256xf32, #tpu.memory_space<vmem>>, vector<8x256xf32>,
    return
  }
  func.func @transform_0(%arg0: i32) -> (i32, i32) {
    %c0_i32 = arith.constant 0 : i32
    %c0_i32_0 = arith.constant 0 : i32
    %c0_i32_1 = arith.constant 0 : i32
    return %c0_i32, %c0_i32_0 : i32, i32
  }
  func.func @transform_1(%arg0: i32) -> (i32, i32) {
    %c0_i32 = arith.constant 0 : i32
    %c0_i32_0 = arith.constant 0 : i32
    return %arg0, %c0_i32 : i32, i32
  }
  func.func @transform_2(%arg0: i32) -> (i32, i32) {
    %c0_i32 = arith.constant 0 : i32
    %c0_i32_0 = arith.constant 0 : i32
    return %c0_i32, %arg0 : i32, i32
  }
  func.func @transform_3(%arg0: i32) -> (i32, i32) {
    %c0_i32 = arith.constant 0 : i32
    %c0_i32_0 = arith.constant 0 : i32
    return %c0_i32, %arg0 : i32, i32
  }
}

</mosaic_0001>

<bundles_post_ra>
// kernel: tpu_custom_call.1
= control target key start
LH: loop header
LB: loop body
LE: loop exit
PB: predicated region body
PF: predicated region fallthrough
CT: control target
= control target key end

     0   :  { %8 = vsyncpa [#allocation3], 0  ;;  %s544_s0 = inlined_call_operand.hbm [shape: bf16[8,256], index: 0, kind: input, shape index: {}]   ;;  %s545_s1 = inlined_call_operand.hbm [shape: bf16[256,256], index: 1, kind: input, shape index: {}]   ;;  %s546_s2 = inlined_call_operand.vmem [shape: f32[1,256], index: 2, kind: input, shape index: {}]   ;;  %s547_s3 = inlined_call_operand.hbm [shape: f32[8,256], index: 3, kind: output, shape index: {}]  }
   0x1   :  { %9 = vsyncpa [#allocation6], 0 }
   0x2   :  { %10 = vsyncpa [#allocation4], 0  ;;  %s473_s12 = smov [#allocation2]   ;;  %s474_s14 = smov [#allocation5]  }
   0x3   :  { %s17_s13 = sshll.u32 %s473_s12, 4  ;;  %s26_s15 = sshll.u32 %s474_s14, 4  ;;  %s18_s13 = int_to_ptr.vmem [resolvable:$true] %s17_s13  ;;  %s498_s15 = int_to_ptr.vmem [resolvable:$true] %s26_s15 }
   0x4   :  { %s401_s18 = scalar_lea.hbm %s544_s0, 128 }
   0x5   :  { %p402_p0 = scmp.ne.s32.totalorder %s544_s0, %s401_s18  ;;  %p405_p1 = scmp.lt.u32.totalorder %s401_s18, %s544_s0 }
   0x7   :  { %p407_p2 = pnand %p405_p1, %p402_p0 }
   0x9   :  { %410 = shalt.err (!%p407_p2)
}
   0xa   :  { %s411_s23 = scalar_lea.vmem %s18_s13, 128  ;;  %p416_p4 = scmp.lt.s32.totalorder %s18_s13, %s18_s13 }
   0xb   :  { %p412_p3 = scmp.ne.s32.totalorder %s18_s13, %s411_s23  ;;  %p417_p5 = scmp.lt.s32.totalorder %s411_s23, %s411_s23 }
   0xd   :  { %p418_p6 = por %p417_p5, %p416_p4 }
   0xf   :  { %p419_p7 = pnand %p418_p6, %p412_p3 }
  0x11   :  { %422 = shalt.err (!%p419_p7)
}
  0x12   :  { %20 = dma.hbm_to_vmem [thread:$0]  %s544_s0, 128, %s18_s13, [#allocation3]  }
  0x13   :  { %s423_s28 = scalar_lea.hbm %s545_s1, 4096 }
  0x14   :  { %p424_p8 = scmp.ne.s32.totalorder %s545_s1, %s423_s28  ;;  %p427_p9 = scmp.lt.u32.totalorder %s423_s28, %s545_s1 }
  0x16   :  { %p429_p10 = pnand %p427_p9, %p424_p8 }
  0x18   :  { %432 = shalt.err (!%p429_p10)
}
  0x19   :  { %s433_s6 = scalar_lea.vmem %s498_s15, 4096  ;;  %p438_p12 = scmp.lt.s32.totalorder %s498_s15, %s498_s15 }
  0x1a   :  { %p434_p11 = scmp.ne.s32.totalorder %s498_s15, %s433_s6  ;;  %p439_p13 = scmp.lt.s32.totalorder %s433_s6, %s433_s6 }
  0x1c   :  { %p440_p0 = por %p439_p13, %p438_p12 }
  0x1e   :  { %p441_p1 = pnand %p440_p0, %p434_p11 }
  0x20   :  { %444 = shalt.err (!%p441_p1)
}
  0x21   :  { %s475_s0 = smov 128   ;;  %s476_s7 = smov 8  }
  0x22   :  { %32 = dma.hbm_to_vmem [thread:$0]  %s545_s1, 4096, %s498_s15, [#allocation6], %s475_s0, %s475_s0, %s476_s7  }
  0x23   :  { %467 = dma.done.wait [#allocation3], 128  }
  0x24   :  { %468 = vsyncadd [#allocation3], 4294967168 }
  0x25   :  { %469 = dma.done.wait [#allocation6], 4096  }
  0x26   :  { %470 = vsyncadd [#allocation6], 4294963200  ;;  %v351_v0 = vld [vmem:[#allocation5 + $0x4] ss:$8 sps:$4 sm:$0xff]   ;;  %v353_v1 = vld [vmem:[#allocation5] ss:$8 sps:$4 sm:$0xff]   ;;  %v76_v35 = vlaneseq }
  0x27   :  { %253 = vmatprep.subr.bf16.mxu0 %v351_v0  ;;  %v354_v2 = vld [vmem:[#allocation5 + $0x14] ss:$8 sps:$4 sm:$0xff]   ;;  %v356_v3 = vld [vmem:[#allocation5 + $0x10] ss:$8 sps:$4 sm:$0xff]   ;;  %v357_v4 = vld [vmem:[#allocation5 + $0x24] ss:$8 sps:$4 sm:$0xff]  }
  0x28   :  { %254 = vmatpush1.bf16.xpose.msra.mxu0 %v353_v1  ;;  %v359_v5 = vld [vmem:[#allocation5 + $0x20] ss:$8 sps:$4 sm:$0xff]   ;;  %v360_v6 = vld [vmem:[#allocation5 + $0x34] ss:$8 sps:$4 sm:$0xff]   ;;  %v362_v9 = vld [vmem:[#allocation5 + $0x30] ss:$8 sps:$4 sm:$0xff]  }
  0x29   :  { %255 = vmatprep.subr.bf16.mxu0 %v354_v2  ;;  %v41_v7 = vld [vmem:[#allocation2] sm:$0xff]  ;;  %v363_v10 = vld [vmem:[#allocation5 + $0x44] ss:$8 sps:$4 sm:$0xff]   ;;  %v365_v11 = vld [vmem:[#allocation5 + $0x40] ss:$8 sps:$4 sm:$0xff]   ;;  %v77_v36 = vshrl.u32 %v76_v35, 7 }
  0x2a   :  { %v313_v8 = vcombine.high %v41_v7, %v41_v7  ;;  %v366_v12 = vld [vmem:[#allocation5 + $0x54] ss:$8 sps:$4 sm:$0xff]   ;;  %v368_v13 = vld [vmem:[#allocation5 + $0x50] ss:$8 sps:$4 sm:$0xff]   ;;  %v369_v14 = vld [vmem:[#allocation5 + $0x64] ss:$8 sps:$4 sm:$0xff]   ;;  %v312_v34 = vcombine.low %v41_v7, %v41_v7 }
  0x2b   :  { %v371_v15 = vld [vmem:[#allocation5 + $0x60] ss:$8 sps:$4 sm:$0xff]   ;;  %v372_v16 = vld [vmem:[#allocation5 + $0x74] ss:$8 sps:$4 sm:$0xff]   ;;  %v374_v17 = vld [vmem:[#allocation5 + $0x70] ss:$8 sps:$4 sm:$0xff]  }
  0x2c   :  { %285 = vmatprep.mubr.bf16.mxu0 %v313_v8  ;;  %v375_v18 = vld [vmem:[#allocation5 + $0x84] ss:$8 sps:$4 sm:$0xff]   ;;  %v377_v19 = vld [vmem:[#allocation5 + $0x80] ss:$8 sps:$4 sm:$0xff]   ;;  %v378_v20 = vld [vmem:[#allocation5 + $0x94] ss:$8 sps:$4 sm:$0xff]  }
  0x2d   :  { %v380_v21 = vld [vmem:[#allocation5 + $0x90] ss:$8 sps:$4 sm:$0xff]   ;;  %v381_v22 = vld [vmem:[#allocation5 + $0xa4] ss:$8 sps:$4 sm:$0xff]   ;;  %v383_v23 = vld [vmem:[#allocation5 + $0xa0] ss:$8 sps:$4 sm:$0xff]  }
  0x2e   :  { %v384_v24 = vld [vmem:[#allocation5 + $0xb4] ss:$8 sps:$4 sm:$0xff]   ;;  %v386_v25 = vld [vmem:[#allocation5 + $0xb0] ss:$8 sps:$4 sm:$0xff]   ;;  %v387_v26 = vld [vmem:[#allocation5 + $0xc4] ss:$8 sps:$4 sm:$0xff]  }
  0x2f   :  { %v389_v27 = vld [vmem:[#allocation5 + $0xc0] ss:$8 sps:$4 sm:$0xff]   ;;  %v390_v28 = vld [vmem:[#allocation5 + $0xd4] ss:$8 sps:$4 sm:$0xff]   ;;  %v392_v29 = vld [vmem:[#allocation5 + $0xd0] ss:$8 sps:$4 sm:$0xff]  }
  0x30   :  { %256 = vmatpush1.bf16.xpose.msra.mxu0 %v356_v3  ;;  %v393_v30 = vld [vmem:[#allocation5 + $0xe4] ss:$8 sps:$4 sm:$0xff]   ;;  %v395_v31 = vld [vmem:[#allocation5 + $0xe0] ss:$8 sps:$4 sm:$0xff]   ;;  %v396_v32 = vld [vmem:[#allocation5 + $0xf4] ss:$8 sps:$4 sm:$0xff]  }
  0x31   :  { %257 = vmatprep.subr.bf16.mxu0 %v357_v4  ;;  %v398_v33 = vld [vmem:[#allocation5 + $0xf0] ss:$8 sps:$4 sm:$0xff]   ;;  %v78_v37 = vsub.s32 0, %v77_v36  ;;  %v82_v39 = vsub.s32 1, %v77_v36  ;;  %s477_s11 = smov [#allocation7]  }
  0x32   :  { %v74_v38 = vld [vmem:[%s546_s2] sm:$0x3]  ;;  %s302_s12 = sshll.u32 %s477_s11, 4  ;;  %s303_s12 = int_to_ptr.vmem [resolvable:$true] %s302_s12 }
  0x33   :  { %v79_v40 = vrot.slane %v74_v38, %v78_v37  ;;  %v83_v41 = vrot.slane %v74_v38, %v82_v39  ;;  %s445_s13 = scalar_lea.vmem %s303_s12, 256  ;;  %p450_p3 = scmp.lt.s32.totalorder %s303_s12, %s303_s12 }
  0x34   :  { %p446_p2 = scmp.ne.s32.totalorder %s303_s12, %s445_s13  ;;  %p451_p4 = scmp.lt.s32.totalorder %s445_s13, %s445_s13 }
  0x36   :  { %p452_p5 = por %p451_p4, %p450_p3 }
  0x38   :  { %258 = vmatpush1.bf16.xpose.msra.mxu0 %v359_v5  ;;  %p453_p6 = pnand %p452_p5, %p446_p2 }
  0x39   :  { %259 = vmatprep.subr.bf16.mxu0 %v360_v6 }
  0x40   :  { %260 = vmatpush1.bf16.xpose.msra.mxu0 %v362_v9 }
  0x41   :  { %261 = vmatprep.subr.bf16.mxu0 %v363_v10 }
  0x48   :  { %262 = vmatpush1.bf16.xpose.msra.mxu0 %v365_v11 }
  0x49   :  { %263 = vmatprep.subr.bf16.mxu0 %v366_v12 }
  0x50   :  { %264 = vmatpush1.bf16.xpose.msra.mxu0 %v368_v13 }
  0x51   :  { %265 = vmatprep.subr.bf16.mxu0 %v369_v14 }
  0x58   :  { %266 = vmatpush1.bf16.xpose.msra.mxu0 %v371_v15 }
  0x59   :  { %267 = vmatprep.subr.bf16.mxu0 %v372_v16 }
  0x60   :  { %268 = vmatpush1.bf16.xpose.msra.mxu0 %v374_v17 }
  0x61   :  { %269 = vmatprep.subr.bf16.mxu0 %v375_v18 }
  0x68   :  { %270 = vmatpush1.bf16.xpose.msra.mxu0 %v377_v19 }
  0x69   :  { %271 = vmatprep.subr.bf16.mxu0 %v378_v20 }
  0x70   :  { %272 = vmatpush1.bf16.xpose.msra.mxu0 %v380_v21 }
  0x71   :  { %273 = vmatprep.subr.bf16.mxu0 %v381_v22 }
  0x78   :  { %274 = vmatpush1.bf16.xpose.msra.mxu0 %v383_v23 }
  0x79   :  { %275 = vmatprep.subr.bf16.mxu0 %v384_v24 }
  0x80   :  { %276 = vmatpush1.bf16.xpose.msra.mxu0 %v386_v25 }
  0x81   :  { %277 = vmatprep.subr.bf16.mxu0 %v387_v26 }
  0x88   :  { %278 = vmatpush1.bf16.xpose.msra.mxu0 %v389_v27 }
  0x89   :  { %279 = vmatprep.subr.bf16.mxu0 %v390_v28 }
  0x90   :  { %280 = vmatpush1.bf16.xpose.msra.mxu0 %v392_v29 }
  0x91   :  { %281 = vmatprep.subr.bf16.mxu0 %v393_v30 }
  0x98   :  { %282 = vmatpush1.bf16.xpose.msra.mxu0 %v395_v31 }
  0x99   :  { %283 = vmatprep.subr.bf16.mxu0 %v396_v32 }
  0xa0   :  { %284 = vmatpush1.bf16.xpose.msra.mxu0 %v398_v33 }
  0xa7   :  { %286 = vmatmul.mubr.bf16.vlgmr.msra.gmra.mrb[0].mxu0 %v312_v34 }
 0x17a   :  { %v287_v42 = vpop.f32.mrb[0].mxu0 }
 0x17b   :  { %v288_v43 = vadd.f32 %v287_v42, %v79_v40  ;;  %v289_v44 = vpop.f32.mrb[1].mxu0 }
 0x17c   :  { %v290_v45 = vadd.f32 %v289_v44, %v83_v41  ;;  %v291_v46 = vpop.f32.mrb[2].mxu0 }
 0x17d   :  { %294 = vst [vmem:[#allocation7] sm:$0xff] %v288_v43  ;;  %v292_v47 = vpop.f32.mrb[3].mxu0 }
 0x17e   :  { %295 = vst [vmem:[#allocation7 + $0x8] sm:$0xff] %v290_v45 }
 0x17f   :  { %456 = shalt.err (!%p453_p6)
}
 0x180   :  { %s457_s15 = scalar_lea.hbm %s547_s3, 256 }
 0x181   :  { %p458_p7 = scmp.ne.s32.totalorder %s547_s3, %s457_s15  ;;  %p461_p8 = scmp.lt.u32.totalorder %s457_s15, %s547_s3 }
 0x183   :  { %p463_p9 = pnand %p461_p8, %p458_p7 }
 0x185   :  { %466 = shalt.err (!%p463_p9)
}
 0x186   :  { %305 = dma.vmem_to_hbm [thread:$0]  %s303_s12, 256, %s547_s3, [#allocation4]  }
 0x187   :  { %471 = dma.done.wait [#allocation4], 256  }
 0x188   :  { %472 = vsyncadd [#allocation4], 4294967040 }
 0x189   :  { %309 = vsyncpa [#allocation3], 1 }
 0x18a   :  { %310 = vsyncpa [#allocation6], 1 }
 0x18b   :  { %311 = vsyncpa [#allocation4], 1 }

</bundles_post_ra>
